<compile_context>
chip_gen: v5e
topology: v5e:2x2
jax: 0.10.0
libtpu: 0.0.40
codegen_flags: <defaults>
</compile_context>

<pallas_src>
import functools

import jax
import jax.numpy as jnp
from jax.experimental import pallas as pl
from jax.experimental.pallas import tpu as pltpu

_LANE = 128
_ON_TPU = jax.default_backend() == "tpu"   # Python flag: on-core PRNG only on real TPU

_VMEM_SPEC = pl.BlockSpec(memory_space=pltpu.MemorySpace.VMEM)
_SMEM_SPEC = pl.BlockSpec(memory_space=pltpu.MemorySpace.SMEM)


# ----------------------------------------------------------------------------
# Kernels (one per static mode -> minimal operand count per variant)
# ----------------------------------------------------------------------------
def _eval_kernel(x_ref, w1_ref, b_ref, w2_ref, o_ref):
    """fc1 -> ReLU -> fc2 (no dropout). Bias buffer packs [b1 | b2_padded]."""
    D = x_ref.shape[-1]
    h = jnp.dot(x_ref[...], w1_ref[...], preferred_element_type=jnp.float32)
    h = jnp.maximum(h + b_ref[:, :D], 0.0)
    out = jnp.dot(h, w2_ref[...], preferred_element_type=jnp.float32)
    o_ref[...] = (out + b_ref[:, _LANE:]).astype(o_ref.dtype)


def _train_kernel_tpu(seed_ref, x_ref, w1_ref, b_ref, w2_ref, o_ref, *,
                      keep_threshold, inv_keep):
    """fc1 -> ReLU -> inverted dropout (on-core HW PRNG) -> fc2."""
    D = x_ref.shape[-1]
    h = jnp.dot(x_ref[...], w1_ref[...], preferred_element_type=jnp.float32)
    h = jnp.maximum(h + b_ref[:, :D], 0.0)

    # Dropout mask generated on-core: keep iff uniform u32 < keep_prob * 2^32.
    pltpu.prng_seed(seed_ref[0])
    bits = pltpu.bitcast(pltpu.prng_random_bits(h.shape), jnp.uint32)
    keep = bits < jnp.uint32(keep_threshold)
    h = jnp.where(keep, h * inv_keep, 0.0)

    out = jnp.dot(h, w2_ref[...], preferred_element_type=jnp.float32)
    o_ref[...] = (out + b_ref[:, _LANE:]).astype(o_ref.dtype)


def _train_kernel_mask(x_ref, w1_ref, b_ref, mask_ref, w2_ref, o_ref):
    """Portable fallback (non-TPU/interpret): mask carries folded 1/(1-p)."""
    D = x_ref.shape[-1]
    h = jnp.dot(x_ref[...], w1_ref[...], preferred_element_type=jnp.float32)
    h = jnp.maximum(h + b_ref[:, :D], 0.0)
    h = h * mask_ref[...]
    out = jnp.dot(h, w2_ref[...], preferred_element_type=jnp.float32)
    o_ref[...] = (out + b_ref[:, _LANE:]).astype(o_ref.dtype)


# ----------------------------------------------------------------------------
# Parameter packing (done ONCE, outside the per-call path)
# ----------------------------------------------------------------------------
def pack_params(w1, b1, w2, b2):
    """Build the lane-dense parameter pack.

    w1: [D, D]  (transposed vs. PyTorch [out, in] so the kernel does x @ W)
    b1: [1, D]
    w2: [D, C]
    b2: [1, C]
    Returns dict with:
      w1 [D, D], w2 padded to [D, C_pad] (C_pad = 128-multiple),
      b packed as [1, 128 + C_pad] = [b1 (cols 0:D) | b2 (cols 128:128+C)].
    """
    D = w1.shape[0]
    C = w2.shape[1]
    assert D <= _LANE, "bias packing layout assumes conv_dim_1 <= 128"
    c_pad = ((C + _LANE - 1) // _LANE) * _LANE
    w2_p = jnp.pad(w2.astype(jnp.float32), ((0, 0), (0, c_pad - C)))
    b_packed = jnp.zeros((1, _LANE + c_pad), jnp.float32)
    b_packed = b_packed.at[:, :D].set(b1.astype(jnp.float32))
    b_packed = b_packed.at[:, _LANE:_LANE + C].set(b2.astype(jnp.float32))
    return {"w1": w1.astype(jnp.float32), "b": b_packed, "w2": w2_p, "n_class": C}


def init_params(key, conv_dim_1, n_class):
    """nn.Linear-style init (uniform +-1/sqrt(fan_in)); returns the padded pack."""
    k1, k2, k3, k4 = jax.random.split(key, 4)
    lim = 1.0 / float(conv_dim_1) ** 0.5
    w1 = jax.random.uniform(k1, (conv_dim_1, conv_dim_1), jnp.float32, -lim, lim)
    b1 = jax.random.uniform(k2, (1, conv_dim_1), jnp.float32, -lim, lim)
    w2 = jax.random.uniform(k3, (conv_dim_1, n_class), jnp.float32, -lim, lim)
    b2 = jax.random.uniform(k4, (1, n_class), jnp.float32, -lim, lim)
    return pack_params(w1, b1, w2, b2)


# ----------------------------------------------------------------------------
# Forward wrapper
# ----------------------------------------------------------------------------
def dataclassifier_forward(x, params, *, training=True, key=None, seed=None, p=0.5):
    """Forward pass matching `fc2(F.dropout(F.relu(fc1(x))))`.

    Note: F.dropout() defaults to training=True in the reference module, so
    dropout is applied unless training=False is passed explicitly. The dropout
    random stream necessarily differs from PyTorch's (expected).
    """
    B, D = x.shape
    C = params["n_class"]
    w1, b, w2 = params["w1"], params["b"], params["w2"]
    c_pad = w2.shape[1]
    out_shape = jax.ShapeDtypeStruct((B, c_pad), jnp.float32)

    if (not training) or p == 0.0:
        out_padded = pl.pallas_call(
            _eval_kernel,
            out_shape=out_shape,
            in_specs=[_VMEM_SPEC] * 4,
            out_specs=_VMEM_SPEC,
        )(x, w1, b, w2)
    else:
        assert 0.0 < p < 1.0, "dropout prob must be in (0, 1) when training"
        keep_prob = 1.0 - p
        if _ON_TPU:
            if seed is None:
                if key is None:
                    raise ValueError("training=True requires `seed` or `key`")
                seed = jax.random.randint(key, (), 0, jnp.iinfo(jnp.int32).max,
                                          dtype=jnp.int32)
            seed_arr = jnp.asarray(seed, jnp.int32).reshape((1,))
            keep_threshold = min(int(round(keep_prob * 2 ** 32)), 2 ** 32 - 1)
            kernel = functools.partial(_train_kernel_tpu,
                                       keep_threshold=keep_threshold,
                                       inv_keep=float(1.0 / keep_prob))
            out_padded = pl.pallas_call(
                kernel,
                out_shape=out_shape,
                in_specs=[_SMEM_SPEC] + [_VMEM_SPEC] * 4,
                out_specs=_VMEM_SPEC,
            )(seed_arr, x, w1, b, w2)
        else:
            # Non-TPU / interpret fallback: host-generated mask with folded scale.
            if key is None:
                raise ValueError("training=True requires a PRNG key off-TPU")
            keep = jax.random.bernoulli(key, keep_prob, (B, D))
            mask = keep.astype(jnp.float32) * (1.0 / keep_prob)
            out_padded = pl.pallas_call(
                _train_kernel_mask,
                out_shape=out_shape,
                in_specs=[_VMEM_SPEC] * 5,
                out_specs=_VMEM_SPEC,
            )(x, w1, b, mask, w2)

    return out_padded[:, :C]


# ----------------------------------------------------------------------------
if __name__ == "__main__":
    key = jax.random.PRNGKey(0)
    kx, kp, kd = jax.random.split(key, 3)

    batch = 8
    conv_dim_1 = 32   # feature dim fed into the classifier
    n_class = 12

    x = jax.random.normal(kx, (batch, conv_dim_1), dtype=jnp.float32)
    params = init_params(kp, conv_dim_1, n_class)

    # Training-mode forward (dropout active, F.dropout default p=0.5).
    out = dataclassifier_forward(x, params, training=True, key=kd)
    out = jax.block_until_ready(out)
    assert out.shape == (batch, n_class)
    assert out.dtype == jnp.float32
    assert bool(jnp.all(jnp.isfinite(out)))

    # Eval-mode forward (no dropout) -> exact check vs. a plain-JAX reference.
    out_eval = dataclassifier_forward(x, params, training=False)
    out_eval = jax.block_until_ready(out_eval)
    h_ref = jnp.maximum(x @ params["w1"] + params["b"][:, :conv_dim_1], 0.0)
    ref = h_ref @ params["w2"][:, :n_class] + params["b"][:, _LANE:_LANE + n_class]
    assert out_eval.shape == (batch, n_class)
    assert bool(jnp.allclose(out_eval, ref, atol=1e-5, rtol=1e-5))

    print("KERNEL_OK")
</pallas_src>

<mosaic_0001>
module attributes {stable_mosaic.version = 11 : i64} {
  func.func @_train_kernel_mask(%arg0: memref<8x32xf32, #tpu.memory_space<vmem>>, %arg1: memref<32x32xf32, #tpu.memory_space<vmem>>, %arg2: memref<1x256xf32, #tpu.memory_space<vmem>>, %arg3: memref<8x32xf32, #tpu.memory_space<vmem>>, %arg4: memref<32x128xf32, #tpu.memory_space<vmem>>, %arg5: memref<8x128xf32, #tpu.memory_space<vmem>>) attributes {dimension_semantics = [], scalar_prefetch = 0 : i64, scratch_operands = 0 : i64, tpu.core_type = #tpu.core_type<tc>} {
    %c0 = arith.constant 0 : index
    %c0_0 = arith.constant 0 : index
    %0 = vector.load %arg0[%c0, %c0_0] : memref<8x32xf32, #tpu.memory_space<vmem>>, vector<8x32xf32>
    %c0_1 = arith.constant 0 : index
    %c0_2 = arith.constant 0 : index
    %1 = vector.load %arg1[%c0_1, %c0_2] : memref<32x32xf32, #tpu.memory_space<vmem>>, vector<32x32xf32>
    %cst = arith.constant dense<0.000000e+00> : vector<8x32xf32>
    %2 = tpu.matmul %0, %1, %cst {dimension_numbers = #tpu.dot_dimension_numbers<[1], [0], [0], [1], [0, 0, 1, 1], [], []>} : vector<8x32xf32>, vector<32x32xf32>, vector<8x32xf32> -> vector<8x32xf32>
    %c0_3 = arith.constant 0 : index
    %c0_4 = arith.constant 0 : index
    %3 = vector.load %arg2[%c0_3, %c0_4] : memref<1x256xf32, #tpu.memory_space<vmem>>, vector<1x32xf32>
    %4 = vector.broadcast %3 : vector<1x32xf32> to vector<8x32xf32>
    %5 = arith.addf %2, %4 : vector<8x32xf32>
    %cst_5 = arith.constant 0.000000e+00 : f32
    %6 = vector.broadcast %cst_5 : f32 to vector<8x32xf32>
    %7 = arith.maximumf %5, %6 : vector<8x32xf32>
    %c0_6 = arith.constant 0 : index
    %c0_7 = arith.constant 0 : index
    %8 = vector.load %arg3[%c0_6, %c0_7] : memref<8x32xf32, #tpu.memory_space<vmem>>, vector<8x32xf32>
    %9 = arith.mulf %7, %8 : vector<8x32xf32>
    %c0_8 = arith.constant 0 : index
    %c0_9 = arith.constant 0 : index
    %10 = vector.load %arg4[%c0_8, %c0_9] : memref<32x128xf32, #tpu.memory_space<vmem>>, vector<32x128xf32>
    %cst_10 = arith.constant dense<0.000000e+00> : vector<8x128xf32>
    %11 = tpu.matmul %9, %10, %cst_10 {dimension_numbers = #tpu.dot_dimension_numbers<[1], [0], [0], [1], [0, 0, 1, 1], [], []>} : vector<8x32xf32>, vector<32x128xf32>, vector<8x128xf32> -> vector<8x128xf32>
    %c0_11 = arith.constant 0 : index
    %c128 = arith.constant 128 : index
    %12 = vector.load %arg2[%c0_11, %c128] : memref<1x256xf32, #tpu.memory_space<vmem>>, vector<1x128xf32>
    %13 = vector.broadcast %12 : vector<1x128xf32> to vector<8x128xf32>
    %14 = arith.addf %11, %13 : vector<8x128xf32>
    %c0_12 = arith.constant 0 : index
    %c0_13 = arith.constant 0 : index
    %15 = vector.load %arg5[%c0_12, %c0_13] : memref<8x128xf32, #tpu.memory_space<vmem>>, vector<8x128xf32>
    tpu.vector_store %arg5[%c0_12, %c0_13], %14 {strides = array<i32>} : memref<8x128xf32, #tpu.memory_space<vmem>>, vector<8x128xf32>,
    return
  }
}

</mosaic_0001>

<bundles_post_ra>
// kernel: tpu_custom_call.1
= control target key start
LH: loop header
LB: loop body
LE: loop exit
PB: predicated region body
PF: predicated region fallthrough
CT: control target
= control target key end

     0   :  { %10 = vsyncpa [#allocation3], 0  ;;  %s402_s0 = inlined_call_operand.hbm [shape: f32[8,32], index: 0, kind: input, shape index: {}]   ;;  %s403_s1 = inlined_call_operand.hbm [shape: f32[32,32], index: 1, kind: input, shape index: {}]   ;;  %s404_s2 = inlined_call_operand.hbm [shape: f32[1,256], index: 2, kind: input, shape index: {}]   ;;  %s405_s3 = inlined_call_operand.hbm [shape: f32[8,32], index: 3, kind: input, shape index: {}]   ;;  %s406_s4 = inlined_call_operand.hbm [shape: f32[32,128], index: 4, kind: input, shape index: {}]   ;;  %s407_s5 = inlined_call_operand.hbm [shape: f32[8,128], index: 5, kind: output, shape index: {}]  }
   0x1   :  { %11 = vsyncpa [#allocation6], 0 }
   0x2   :  { %12 = vsyncpa [#allocation9], 0  ;;  %s29_s20 = sshll.u32 %s403_s1, 4  ;;  %s30_s20 = int_to_ptr.hbm [resolvable:$true] %s29_s20 }
   0x3   :  { %13 = vsyncpa [#allocation4], 0  ;;  %s344_s21 = smov [#allocation5]   ;;  %s54_s25 = sshll.u32 %s405_s3, 4  ;;  %s55_s25 = int_to_ptr.hbm [resolvable:$true] %s54_s25 }
   0x4   :  { %s31_s22 = sshll.u32 %s344_s21, 4  ;;  %s345_s26 = smov 128   ;;  %s32_s22 = int_to_ptr.vmem [resolvable:$true] %s31_s22 }
   0x5   :  { %s346_s27 = smov 8   ;;  %s347_s28 = smov [#allocation8]  }
   0x6   :  { %37 = dma.hbm_to_vmem [thread:$0]  %s30_s20, 512, %s32_s22, [#allocation6], %s345_s26, %s345_s26, %s346_s27  }
   0x7   :  { %s56_s29 = sshll.u32 %s347_s28, 4  ;;  %s19_s7 = sshll.u32 %s402_s0, 4  ;;  %s57_s29 = int_to_ptr.vmem [resolvable:$true] %s56_s29  ;;  %s20_s7 = int_to_ptr.hbm [resolvable:$true] %s19_s7 }
   0x8   :  { %59 = dma.hbm_to_vmem [thread:$0]  %s55_s25, 128, %s57_s29, [#allocation9]  }
   0x9   :  { %s43_s9 = sshll.u32 %s404_s2, 4  ;;  %s348_s10 = smov [#allocation2]   ;;  %s44_s9 = int_to_ptr.hbm [resolvable:$true] %s43_s9 }
   0xa   :  { %s21_s11 = sshll.u32 %s348_s10, 4  ;;  %s349_s3 = smov [#allocation7]   ;;  %s22_s11 = int_to_ptr.vmem [resolvable:$true] %s21_s11 }
   0xb   :  { %24 = dma.hbm_to_vmem [thread:$0]  %s20_s7, 128, %s22_s11, [#allocation3]  }
   0xc   :  { %s45_s12 = sshll.u32 %s349_s3, 4  ;;  %s64_s15 = sshll.u32 %s406_s4, 4  ;;  %s46_s12 = int_to_ptr.vmem [resolvable:$true] %s45_s12  ;;  %s65_s15 = int_to_ptr.hbm [resolvable:$true] %s64_s15 }
   0xd   :  { %48 = dma.hbm_to_vmem [thread:$0]  %s44_s9, 32, %s46_s12, [#allocation6]  }
   0xe   :  { %s350_s0 = smov [#allocation10]  }
   0xf   :  { %s66_s16 = sshll.u32 %s350_s0, 4  ;;  %s67_s16 = int_to_ptr.vmem [resolvable:$true] %s66_s16 }
  0x10   :  { %72 = dma.hbm_to_vmem [thread:$0]  %s65_s15, 512, %s67_s16, [#allocation9], %s345_s26, %s345_s26, %s346_s27  }
  0x11   :  { %336 = dma.done.wait [#allocation3], 128  }
  0x12   :  { %337 = vsyncadd [#allocation3], 4294967168 }
  0x13   :  { %338 = dma.done.wait [#allocation6], 544  }
  0x14   :  { %339 = vsyncadd [#allocation6], 4294966752 }
  0x15   :  { %340 = dma.done.wait [#allocation9], 640  }
  0x16   :  { %341 = vsyncadd [#allocation9], 4294966656  ;;  %v97_v0 = vld [vmem:[#allocation5 + $0x18] sm:$0xff]  ;;  %v96_v1 = vld [vmem:[#allocation5 + $0x10] sm:$0xff]  ;;  %vm102_vm0 = vcmask 261120   ;;  %s351_s2 = smov [#allocation11]  }
  0x17   :  { %118 = vmatpush.msra.mxu0 %v97_v0  ;;  %v95_v2 = vld [vmem:[#allocation5 + $0x8] sm:$0xff]  ;;  %v94_v3 = vld [vmem:[#allocation5] sm:$0xff]  ;;  %v93_v4 = vld [vmem:[#allocation2] sm:$0xff]  ;;  %s166_s4 = sshll.u32 %s351_s2, 4  ;;  %s168_s19 = sshll.u32 %s407_s5, 4  ;;  %s167_s4 = int_to_ptr.vmem [resolvable:$true] %s166_s4  ;;  %s169_s19 = int_to_ptr.hbm [resolvable:$true] %s168_s19 }
  0x18   :  { %v132_v5 = vld [vmem:[#allocation10 + $0x18] sm:$0xff]  ;;  %v131_v6 = vld [vmem:[#allocation10 + $0x10] sm:$0xff]  ;;  %v130_v7 = vld [vmem:[#allocation10 + $0x8] sm:$0xff] }
  0x19   :  { %119 = vmatpush.msra.mxu0 %v96_v1  ;;  %152 = vmatpush.msra.mxu1 %v132_v5  ;;  %v129_v8 = vld [vmem:[#allocation10] sm:$0xff]  ;;  %v190_v9 = vld [vmem:[#allocation7] ss:$0 sm:$0xff]  ;;  %v127_v12 = vld [vmem:[#allocation8] sm:$0xff] }
  0x1a   :  { %v191_v15 = vld [vmem:[#allocation7 + $0x1] ss:$0 sm:$0xff] }
  0x1b   :  { %120 = vmatpush.msra.mxu0 %v95_v2  ;;  %153 = vmatpush.msra.mxu1 %v131_v6 }
  0x1d   :  { %121 = vmatpush.msra.mxu0 %v94_v3  ;;  %154 = vmatpush.msra.mxu1 %v130_v7 }
  0x1e   :  { %180 = vmatmul.msk.f32.vlgmr.msra.gmra.mxu0 %vm102_vm0, %v93_v4 }
  0x1f   :  { %155 = vmatpush.msra.mxu1 %v129_v8 }
  0x9b   :  { %v123_v10 = vpop.f32.mrf.mxu0 }
  0x9c   :  { %v124_v11 = vadd.f32 %v190_v9, %v123_v10 }
  0x9e   :  { %v126_v13 = vmax.f32 %v124_v11, 0.0 }
  0xa0   :  { %v128_v14 = vmul.f32 %v127_v12, %v126_v13 }
  0xa2   :  { %181 = vmatmul.msk.f32.vlgmr.msra.gmra.mxu1 %vm102_vm0, %v128_v14 }
 0x11f   :  { %v157_v16 = vpop.f32.mrf.mxu1 }
 0x120   :  { %v158_v17 = vadd.f32 %v191_v15, %v157_v16 }
 0x122   :  { %160 = vst [vmem:[#allocation11] sm:$0xff] %v158_v17 }
 0x123   :  { %171 = dma.vmem_to_hbm [thread:$0]  %s167_s4, 128, %s169_s19, [#allocation4]  }
 0x124   :  { %342 = dma.done.wait [#allocation4], 128  }
 0x125   :  { %343 = vsyncadd [#allocation4], 4294967168 }
 0x126   :  { %176 = vsyncpa [#allocation3], 1 }
 0x127   :  { %177 = vsyncpa [#allocation6], 1 }
 0x128   :  { %178 = vsyncpa [#allocation9], 1 }
 0x129   :  { %179 = vsyncpa [#allocation4], 1 }

</bundles_post_ra>
